<compile_context>
chip_gen: v6e
topology: v6e:2x2x1
jax: 0.10.0
libtpu: 0.0.40
codegen_flags: <defaults>
</compile_context>

<pallas_src>
import jax
import jax.numpy as jnp
from jax.experimental import pallas as pl
from jax.experimental.pallas import tpu as pltpu


# --------------------------------------------------------------------------- #
# Kernels
# --------------------------------------------------------------------------- #
def ffn_kernel_acc(x_ref, w1t_ref, b1_ref, w2t_ref, b2_ref, o_ref, acc_ref):
    # x_ref   : (tm, d_model)     native x dtype (cast to bf16 inside)
    # w1t_ref : (d_model, tk_ff)  bf16 (W1.T chunk k)
    # b1_ref  : (1, tk_ff)        f32
    # w2t_ref : (tk_ff, d_model)  bf16 (W2.T chunk k)
    # b2_ref  : (1, d_model)      f32
    # o_ref   : (tm, d_model)     out dtype (non-f32 path)
    # acc_ref : (tm, d_model)     f32 scratch accumulator
    k = pl.program_id(1)

    @pl.when(k == 0)
    def _():
        # Seed the accumulator with b2 so the epilogue is a pure cast.
        acc_ref[...] = jnp.broadcast_to(b2_ref[...], acc_ref.shape).astype(jnp.float32)

    x = x_ref[...].astype(w1t_ref.dtype)        # cast on VPU, hidden under MXU
    h = jnp.dot(x, w1t_ref[...], preferred_element_type=jnp.float32)
    h = jnp.maximum(h + b1_ref[...], 0.0)       # bias + ReLU, per-chunk, f32
    acc_ref[...] += jnp.dot(
        h.astype(w2t_ref.dtype), w2t_ref[...], preferred_element_type=jnp.float32
    )

    @pl.when(k == pl.num_programs(1) - 1)
    def _():
        o_ref[...] = acc_ref[...].astype(o_ref.dtype)


def ffn_kernel_f32out(x_ref, w1t_ref, b1_ref, w2t_ref, b2_ref, o_ref):
    # Same as above but accumulates directly into the resident f32 output
    # block (its index is constant across k), saving the f32 scratch VMEM.
    k = pl.program_id(1)

    @pl.when(k == 0)
    def _():
        o_ref[...] = jnp.broadcast_to(b2_ref[...], o_ref.shape)

    x = x_ref[...].astype(w1t_ref.dtype)
    h = jnp.dot(x, w1t_ref[...], preferred_element_type=jnp.float32)
    h = jnp.maximum(h + b1_ref[...], 0.0)
    o_ref[...] += jnp.dot(
        h.astype(w2t_ref.dtype), w2t_ref[...], preferred_element_type=jnp.float32
    )


# --------------------------------------------------------------------------- #
# Chip-aware configuration
# --------------------------------------------------------------------------- #
def _tpu_config():
    """Return (vmem_capacity_bytes, has_multiple_tensorcores)."""
    kind = ""
    try:
        kind = (jax.devices()[0].device_kind or "").lower()
    except Exception:
        pass
    vmem_cap = 0
    try:
        info = pltpu.get_tpu_info()
        vmem_cap = int(getattr(info, "vmem_capacity_bytes", 0) or 0)
    except Exception:
        vmem_cap = 0
    if vmem_cap <= 0:
        # v4/v5/v6 generations: 128 MiB per TensorCore; v7x (and unknown): 64 MiB.
        vmem_cap = (128 * 1024 * 1024
                    if any(s in kind for s in ("v4", "v5", "v6"))
                    else 64 * 1024 * 1024)
    # Chips with >1 TensorCore sharing the grid (megacore): v4, v5p, v7x.
    multicore = any(s in kind for s in ("v4", "v5p", "7"))
    return vmem_cap, multicore


def _pick_tile_ff(d_ff, target):
    """Largest tile <= target dividing d_ff; prefer multiples of 256 (full MXU
    column width on v6e/v7x), fall back to multiples of 128, else full d_ff."""
    if d_ff <= target:
        return d_ff
    for step in (256, 128):
        cand = (target // step) * step
        while cand >= step:
            if d_ff % cand == 0:
                return cand
            cand -= step
    return d_ff


def _vmem_tile_bytes(tile_m, tile_ff, d_model, x_bytes, w_bytes, out_bytes,
                     use_scratch):
    """Rough per-step VMEM footprint incl. double buffers and the spilled h."""
    b = 2 * tile_m * d_model * x_bytes          # x block (double buffered)
    b += 2 * tile_m * d_model * out_bytes       # out block
    b += 2 * d_model * tile_ff * w_bytes        # W1.T chunk
    b += 2 * tile_ff * d_model * w_bytes        # W2.T chunk
    b += 2 * (tile_ff + d_model) * 4            # biases (f32)
    if use_scratch:
        b += tile_m * d_model * 4               # f32 accumulator
    b += tile_m * tile_ff * (4 + w_bytes)       # h (f32) + its bf16 copy
    return b


def _pick_tiles(M, d_model, d_ff, x_bytes, w_bytes, out_bytes, use_scratch,
                vmem_cap, multicore):
    budget = int(0.70 * vmem_cap)  # headroom for Mosaic internal scratch

    # tile_m candidates, largest (best weight reuse) first.
    if M <= 512:
        tm0 = M
        if multicore and M >= 32 and M % 32 == 0:
            tm0 = M // 2   # feed both TensorCores; halves stay multiples of 16
        tm_cands = [tm0]
        c = tm0
        while c > 16:
            c = max(16, (c // 2) // 8 * 8)
            if c not in tm_cands:
                tm_cands.append(c)
    else:
        tm_cands = [512, 384, 256, 128, 64, 32, 16]

    # tile_ff candidates: fully resident weights first, then large chunks.
    ff_cands = [d_ff]
    for tgt in (2048, 1024, 512, 256, 128):
        tf = _pick_tile_ff(d_ff, tgt)
        if tf not in ff_cands:
            ff_cands.append(tf)

    # Prefer large tm; shrink tile_ff before shrinking tm.
    for tm in tm_cands:
        for tf in ff_cands:
            if _vmem_tile_bytes(tm, tf, d_model, x_bytes, w_bytes, out_bytes,
                                use_scratch) <= budget:
                return tm, tf
    return tm_cands[-1], ff_cands[-1]


# --------------------------------------------------------------------------- #
# Parameter prep (once, outside the hot path)
# --------------------------------------------------------------------------- #
def prepare_params(w1, b1, w2, b2, *, compute_dtype=jnp.bfloat16):
    """w1: (d_ff, d_model), w2: (d_model, d_ff) in nn.Linear layout.
    Returns pre-transposed bf16 weights + f32 row-vector biases."""
    w1t = jnp.asarray(w1).T.astype(compute_dtype)          # (d_model, d_ff)
    w2t = jnp.asarray(w2).T.astype(compute_dtype)          # (d_ff, d_model)
    b1r = jnp.asarray(b1).reshape(1, -1).astype(jnp.float32)
    b2r = jnp.asarray(b2).reshape(1, -1).astype(jnp.float32)
    return w1t, b1r, w2t, b2r


# --------------------------------------------------------------------------- #
# Wrapper
# --------------------------------------------------------------------------- #
def position_wise_ffn(x, w1t, b1, w2t, b2):
    """x: (batch, seq, d_model). Weights/biases from `prepare_params`."""
    batch, seq, d_model = x.shape
    d_ff = w1t.shape[1]
    M = batch * seq
    out_dtype = x.dtype

    x2d = x.reshape(M, d_model)                  # native dtype; cast in-kernel
    b1r = b1.reshape(1, d_ff).astype(jnp.float32)
    b2r = b2.reshape(1, d_model).astype(jnp.float32)

    x_bytes = jnp.dtype(x.dtype).itemsize
    w_bytes = jnp.dtype(w1t.dtype).itemsize
    out_bytes = jnp.dtype(out_dtype).itemsize
    f32_out = jnp.dtype(out_dtype) == jnp.dtype(jnp.float32)
    use_scratch = not f32_out

    vmem_cap, multicore = _tpu_config()
    tile_m, tile_ff = _pick_tiles(M, d_model, d_ff, x_bytes, w_bytes, out_bytes,
                                  use_scratch, vmem_cap, multicore)
    assert d_ff % tile_ff == 0, "reduction tiles must divide d_ff exactly"
    num_m_tiles = -(-M // tile_m)
    grid = (num_m_tiles, d_ff // tile_ff)

    # Realistic HBM traffic: weights are re-streamed once per M tile unless the
    # whole d_ff is resident (constant block index across the grid).
    weight_passes = 1 if tile_ff == d_ff else num_m_tiles
    cost = pl.CostEstimate(
        flops=4 * M * d_model * d_ff,
        transcendentals=0,
        bytes_accessed=(
            M * d_model * x_bytes
            + weight_passes * 2 * d_model * d_ff * w_bytes
            + 4 * (d_ff + d_model)
            + M * d_model * out_bytes
        ),
    )

    in_specs = [
        pl.BlockSpec((tile_m, d_model), lambda i, k: (i, 0)),
        pl.BlockSpec((d_model, tile_ff), lambda i, k: (0, k)),
        pl.BlockSpec((1, tile_ff), lambda i, k: (0, k)),
        pl.BlockSpec((tile_ff, d_model), lambda i, k: (k, 0)),
        pl.BlockSpec((1, d_model), lambda i, k: (0, 0)),
    ]
    out_spec = pl.BlockSpec((tile_m, d_model), lambda i, k: (i, 0))

    kernel = ffn_kernel_f32out if f32_out else ffn_kernel_acc
    scratch = [] if f32_out else [pltpu.VMEM((tile_m, d_model), jnp.float32)]

    out2d = pl.pallas_call(
        kernel,
        out_shape=jax.ShapeDtypeStruct((M, d_model), out_dtype),
        grid_spec=pltpu.PrefetchScalarGridSpec(
            num_scalar_prefetch=0,
            grid=grid,
            in_specs=in_specs,
            out_specs=out_spec,
            scratch_shapes=scratch,
        ),
        compiler_params=pltpu.CompilerParams(
            dimension_semantics=("parallel", "arbitrary"),
            vmem_limit_bytes=int(0.80 * vmem_cap),
        ),
        cost_estimate=cost,
    )(x2d, w1t, b1r, w2t, b2r)

    return out2d.reshape(batch, seq, d_model)


# --------------------------------------------------------------------------- #
# Init matching nn.Linear defaults (for the self-test)
# --------------------------------------------------------------------------- #
def init_params(key, d_model, d_ff, dtype=jnp.float32):
    k1, k2, k3, k4 = jax.random.split(key, 4)
    bound1 = 1.0 / (d_model ** 0.5)
    bound2 = 1.0 / (d_ff ** 0.5)
    w1 = jax.random.uniform(k1, (d_ff, d_model), dtype, -bound1, bound1)
    b1 = jax.random.uniform(k2, (d_ff,), dtype, -bound1, bound1)
    w2 = jax.random.uniform(k3, (d_model, d_ff), dtype, -bound2, bound2)
    b2 = jax.random.uniform(k4, (d_model,), dtype, -bound2, bound2)
    return w1, b1, w2, b2


if __name__ == "__main__":
    key = jax.random.PRNGKey(0)
    kx, kp = jax.random.split(key)

    batch, seq, d_model, d_ff = 2, 8, 32, 64
    x = jax.random.normal(kx, (batch, seq, d_model), jnp.float32)
    w1, b1, w2, b2 = init_params(kp, d_model, d_ff)

    # One-time parameter prep (transpose + bf16 cast) outside the hot path.
    w1t, b1r, w2t, b2r = prepare_params(w1, b1, w2, b2)

    y = position_wise_ffn(x, w1t, b1r, w2t, b2r)
    y = jax.block_until_ready(y)

    # Pure-JAX reference mirroring the kernel's bf16 operand quantization
    # (bf16 MXU inputs, f32 accumulation), so the comparison is tight.
    xq = x.astype(jnp.bfloat16).astype(jnp.float32).reshape(-1, d_model)
    w1f = w1t.astype(jnp.float32)
    w2f = w2t.astype(jnp.float32)
    h_ref = jnp.maximum(xq @ w1f + b1r, 0.0)
    hq = h_ref.astype(jnp.bfloat16).astype(jnp.float32)
    y_ref = (hq @ w2f + b2r).reshape(batch, seq, d_model)

    assert y.shape == (batch, seq, d_model)
    assert y.dtype == x.dtype
    assert jnp.allclose(y, y_ref, atol=1e-2, rtol=1e-2), "mismatch vs reference"

    print("KERNEL_OK")
</pallas_src>

<mosaic_0001>
module attributes {stable_mosaic.version = 11 : i64} {
  func.func @ffn_kernel_f32out(%arg0: i32, %arg1: i32, %arg2: memref<16x32xf32, #tpu.memory_space<vmem>>, %arg3: memref<32x64xbf16, #tpu.memory_space<vmem>>, %arg4: memref<1x64xf32, #tpu.memory_space<vmem>>, %arg5: memref<64x32xbf16, #tpu.memory_space<vmem>>, %arg6: memref<1x32xf32, #tpu.memory_space<vmem>>, %arg7: memref<16x32xf32, #tpu.memory_space<vmem>>) attributes {dimension_semantics = [#tpu.dimension_semantics<parallel>, #tpu.dimension_semantics<arbitrary>], iteration_bounds = array<i64: 1, 1>, scalar_prefetch = 0 : i64, scratch_operands = 0 : i64, tpu.core_type = #tpu.core_type<tc>, window_params = [{transform_indices = @transform_0, window_bounds = array<i64: 16, 32>}, {transform_indices = @transform_1, window_bounds = array<i64: 32, 64>}, {transform_indices = @transform_2, window_bounds = array<i64: 1, 64>}, {transform_indices = @transform_3, window_bounds = array<i64: 64, 32>}, {pipeline_mode = #tpu.pipeline_mode<synchronous>, transform_indices = @transform_4, window_bounds = array<i64: 1, 32>}, {transform_indices = @transform_5, window_bounds = array<i64: 16, 32>}]} {
    %c0_i32 = arith.constant 0 : i32
    %0 = arith.cmpi eq, %arg1, %c0_i32 : i32
    %1 = arith.extui %0 : i1 to i32
    %c0_i32_0 = arith.constant 0 : i32
    %2 = arith.cmpi ne, %1, %c0_i32_0 : i32
    scf.if %2 {
      %c0_14 = arith.constant 0 : index
      %c0_15 = arith.constant 0 : index
      %18 = vector.load %arg6[%c0_14, %c0_15] : memref<1x32xf32, #tpu.memory_space<vmem>>, vector<1x32xf32>
      %19 = vector.shape_cast %18 : vector<1x32xf32> to vector<1x32xf32>
      %20 = vector.broadcast %19 : vector<1x32xf32> to vector<16x32xf32>
      %c0_16 = arith.constant 0 : index
      %c0_17 = arith.constant 0 : index
      %21 = vector.load %arg7[%c0_16, %c0_17] : memref<16x32xf32, #tpu.memory_space<vmem>>, vector<16x32xf32>
      tpu.vector_store %arg7[%c0_16, %c0_17], %20 {strides = array<i32>} : memref<16x32xf32, #tpu.memory_space<vmem>>, vector<16x32xf32>,
    } else {
    }
    %c0 = arith.constant 0 : index
    %c0_1 = arith.constant 0 : index
    %3 = vector.load %arg2[%c0, %c0_1] : memref<16x32xf32, #tpu.memory_space<vmem>>, vector<16x32xf32>
    %4 = arith.truncf %3 : vector<16x32xf32> to vector<16x32xbf16>
    %c0_2 = arith.constant 0 : index
    %c0_3 = arith.constant 0 : index
    %5 = vector.load %arg3[%c0_2, %c0_3] : memref<32x64xbf16, #tpu.memory_space<vmem>>, vector<32x64xbf16>
    %cst = arith.constant dense<0.000000e+00> : vector<16x64xf32>
    %6 = tpu.matmul %4, %5, %cst {dimension_numbers = #tpu.dot_dimension_numbers<[1], [0], [0], [1], [0, 0, 1, 1], [], []>} : vector<16x32xbf16>, vector<32x64xbf16>, vector<16x64xf32> -> vector<16x64xf32>
    %c0_4 = arith.constant 0 : index
    %c0_5 = arith.constant 0 : index
    %7 = vector.load %arg4[%c0_4, %c0_5] : memref<1x64xf32, #tpu.memory_space<vmem>>, vector<1x64xf32>
    %8 = vector.broadcast %7 : vector<1x64xf32> to vector<16x64xf32>
    %9 = arith.addf %6, %8 : vector<16x64xf32>
    %cst_6 = arith.constant 0.000000e+00 : f32
    %10 = vector.broadcast %cst_6 : f32 to vector<16x64xf32>
    %11 = arith.maximumf %9, %10 : vector<16x64xf32>
    %c0_7 = arith.constant 0 : index
    %c0_8 = arith.constant 0 : index
    %12 = vector.load %arg7[%c0_7, %c0_8] : memref<16x32xf32, #tpu.memory_space<vmem>>, vector<16x32xf32>
    %13 = arith.truncf %11 : vector<16x64xf32> to vector<16x64xbf16>
    %c0_9 = arith.constant 0 : index
    %c0_10 = arith.constant 0 : index
    %14 = vector.load %arg5[%c0_9, %c0_10] : memref<64x32xbf16, #tpu.memory_space<vmem>>, vector<64x32xbf16>
    %cst_11 = arith.constant dense<0.000000e+00> : vector<16x32xf32>
    %15 = tpu.matmul %13, %14, %cst_11 {dimension_numbers = #tpu.dot_dimension_numbers<[1], [0], [0], [1], [0, 0, 1, 1], [], []>} : vector<16x64xbf16>, vector<64x32xbf16>, vector<16x32xf32> -> vector<16x32xf32>
    %16 = arith.addf %12, %15 : vector<16x32xf32>
    %c0_12 = arith.constant 0 : index
    %c0_13 = arith.constant 0 : index
    %17 = vector.load %arg7[%c0_12, %c0_13] : memref<16x32xf32, #tpu.memory_space<vmem>>, vector<16x32xf32>
    tpu.vector_store %arg7[%c0_12, %c0_13], %16 {strides = array<i32>} : memref<16x32xf32, #tpu.memory_space<vmem>>, vector<16x32xf32>,
    return
  }
  func.func @transform_0(%arg0: i32, %arg1: i32) -> (i32, i32) {
    %c0_i32 = arith.constant 0 : i32
    %c0_i32_0 = arith.constant 0 : i32
    return %arg0, %c0_i32 : i32, i32
  }
  func.func @transform_1(%arg0: i32, %arg1: i32) -> (i32, i32) {
    %c0_i32 = arith.constant 0 : i32
    %c0_i32_0 = arith.constant 0 : i32
    return %c0_i32, %arg1 : i32, i32
  }
  func.func @transform_2(%arg0: i32, %arg1: i32) -> (i32, i32) {
    %c0_i32 = arith.constant 0 : i32
    %c0_i32_0 = arith.constant 0 : i32
    return %c0_i32, %arg1 : i32, i32
  }
  func.func @transform_3(%arg0: i32, %arg1: i32) -> (i32, i32) {
    %c0_i32 = arith.constant 0 : i32
    %c0_i32_0 = arith.constant 0 : i32
    return %arg1, %c0_i32 : i32, i32
  }
  func.func @transform_4(%arg0: i32, %arg1: i32) -> (i32, i32) {
    %c0_i32 = arith.constant 0 : i32
    %c0_i32_0 = arith.constant 0 : i32
    %c0_i32_1 = arith.constant 0 : i32
    return %c0_i32, %c0_i32_0 : i32, i32
  }
  func.func @transform_5(%arg0: i32, %arg1: i32) -> (i32, i32) {
    %c0_i32 = arith.constant 0 : i32
    %c0_i32_0 = arith.constant 0 : i32
    return %arg0, %c0_i32 : i32, i32
  }
}

</mosaic_0001>

<bundles_post_ra>
// kernel: tpu_custom_call.1
= control target key start
LH: loop header
LB: loop body
LE: loop exit
PB: predicated region body
PF: predicated region fallthrough
CT: control target
= control target key end

     0   :  { %v280_v1 = vmov 0.0   ;;  %vm281_vm0 = vmmov 0   ;;  %vm33_vm1 = vcmask 261120   ;;  %s353_s0 = inlined_call_operand.vmem [shape: f32[16,32], index: 0, kind: input, shape index: {}]   ;;  %s354_s1 = inlined_call_operand.vmem [shape: bf16[32,64], index: 1, kind: input, shape index: {}]   ;;  %s355_s2 = inlined_call_operand.vmem [shape: f32[1,64], index: 2, kind: input, shape index: {}]   ;;  %s356_s3 = inlined_call_operand.vmem [shape: bf16[64,32], index: 3, kind: input, shape index: {}]   ;;  %s357_s4 = inlined_call_operand.vmem [shape: f32[1,32], index: 4, kind: input, shape index: {}]   ;;  %s358_s5 = inlined_call_operand.hbm [shape: f32[16,32], index: 5, kind: output, shape index: {}]  }
   0x1   :  { %v252_v0 = vld [vmem:[%s354_s1 + $0x8] sm:$0xff]   ;;  %227 = vmatprep.subr.bf16.mxu0 %v280_v1  ;;  %v253_v2 = vld [vmem:[%s354_s1] sm:$0xff]   ;;  %235 = vmatprep.subr.bf16.mxu1 %v280_v1  ;;  %v254_v5 = vld [vmem:[%s356_s3 + $0x18] sm:$0xff]  }
   0x2   :  { %228 = vmatpush3.bf16.msra.mxu0 %v252_v0  ;;  %231 = vmatprep.mubr.msk.bf16.mxu0 %vm281_vm0, %v280_v1  ;;  %v36_v3 = vld [vmem:[%s353_s0] sm:$0xff]  ;;  %v37_v4 = vld [vmem:[%s353_s0 + $0x8] sm:$0xff] }
   0x3   :  { %229 = vmatprep.subr.bf16.mxu0 %v280_v1  ;;  %243 = vmatprep.mubr.msk.bf16.mxu1 %vm281_vm0, %v280_v1  ;;  %v38_v6 = vpack.c.bf16 %v37_v4, %v36_v3 }
   0x4   :  { %236 = vmatpush3.bf16.msra.mxu1 %v254_v5 }
   0x5   :  { %237 = vmatprep.subr.bf16.mxu1 %v280_v1 }
   0x6   :  { %230 = vmatpush3.bf16.msra.mxu0 %v253_v2 }
   0x7   :  { %10 = vsyncpa [#allocation3], 0  ;;  %v255_v7 = vld [vmem:[%s356_s3 + $0x10] sm:$0xff]   ;;  %v256_v8 = vld [vmem:[%s356_s3 + $0x8] sm:$0xff]   ;;  %vm144_vm2 = vcmask 523264  }
   0x8   :  { %238 = vmatpush3.bf16.msra.mxu1 %v255_v7  ;;  %v257_v9 = vld [vmem:[%s356_s3] sm:$0xff]   ;;  %s282_s3 = smov [#allocation2]  }
   0x9   :  { %232 = vmatmul.mubr.msk.bf16.vlgmr.msra.gmra.mxu0 %vm33_vm1, %v38_v6  ;;  %239 = vmatprep.subr.bf16.mxu1 %v280_v1  ;;  %v209_v10 = vld [vmem:[%s357_s4] ss:$0 sm:$0xff]  ;;  %s198_s4 = sshll.u32 %s282_s3, 4  ;;  %s199_s4 = int_to_ptr.vmem [resolvable:$true] %s198_s4 }
   0xa   :  { %34 = vst.msk [vmem:[#allocation2] sm:$0xff] %vm33_vm1, %v209_v10  ;;  %35 = vst.msk [vmem:[#allocation2 + $0x8] sm:$0xff] %vm33_vm1, %v209_v10  ;;  %v210_v11 = vld [vmem:[%s355_s2] ss:$0 sm:$0xff]  ;;  %s258_s2 = scalar_lea.vmem %s199_s4, 256  ;;  %p263_p1 = scmp.lt.s32.totalorder %s199_s4, %s199_s4 }
   0xb   :  { %p259_p0 = scmp.ne.s32.totalorder %s199_s4, %s258_s2  ;;  %p264_p2 = scmp.lt.s32.totalorder %s258_s2, %s258_s2 }
   0xc   :  { %240 = vmatpush3.bf16.msra.mxu1 %v256_v8 }
   0xd   :  { %241 = vmatprep.subr.bf16.mxu1 %v280_v1  ;;  %p265_p3 = por %p264_p2, %p263_p1 }
   0xf   :  { %p266_p4 = pnand %p265_p3, %p259_p0 }
  0x10   :  { %242 = vmatpush3.bf16.msra.mxu1 %v257_v9 }
  0x11   :  { %v109_v21 = vld [vmem:[#allocation2] sm:$0xff]  ;;  %v110_v25 = vld [vmem:[#allocation2 + $0x8] sm:$0xff] }
  0xc9   :  { %v100_v12 = vpop.f32.mrf.mxu0 }
  0xca   :  { %v101_v14 = vadd.f32 %v210_v11, %v100_v12 }
  0xcb   :  { %v233_v13 = vpop.f32.mrf.mxu0 }
  0xcc   :  { %v107_v18 = vmax.f32 %v101_v14, 0.0 }
  0xcd   :  { %v103_v15 = vpop.f32.mrf.mxu0 }
  0xce   :  { %v104_v16 = vadd.f32 %v210_v11, %v103_v15 }
  0xcf   :  { %v234_v17 = vpop.f32.mrf.mxu0 }
  0xd0   :  { %v108_v19 = vmax.f32 %v104_v16, 0.0 }
  0xd2   :  { %v111_v20 = vpack.c.bf16 %v108_v19, %v107_v18 }
  0xd4   :  { %244 = vmatmul.mubr.msk.bf16.vlgmr.msra.gmra.mxu1 %vm144_vm2, %v111_v20 }
 0x194   :  { %v182_v22 = vpop.f32.mrf.mxu1 }
 0x195   :  { %v189_v23 = vadd.f32 %v182_v22, %v109_v21 }
 0x196   :  { %v245_v24 = vpop.f32.mrf.mxu1 }
 0x197   :  { %191 = vst.msk [vmem:[#allocation2] sm:$0xff] %vm33_vm1, %v189_v23 }
 0x198   :  { %v185_v26 = vpop.f32.mrf.mxu1 }
 0x199   :  { %v190_v27 = vadd.f32 %v185_v26, %v110_v25 }
 0x19a   :  { %v246_v28 = vpop.f32.mrf.mxu1 }
 0x19b   :  { %192 = vst.msk [vmem:[#allocation2 + $0x8] sm:$0xff] %vm33_vm1, %v190_v27 }
 0x19c   :  { %269 = shalt.err (!%p266_p4)
}
 0x19d   :  { %s283_s11 = smov 128   ;;  %s284_s12 = smov 8  }
 0x19e   :  { %204 = dma.vmem_to_hbm [thread:$0]  %s199_s4, 256, %s358_s5, [#allocation3], %s283_s11, %s283_s11, %s284_s12  }
 0x19f   :  { %278 = dma.done.wait [#allocation3], 256  }
 0x1a0   :  { %279 = vsyncadd [#allocation3], 4294967040 }
 0x1a1   :  { %208 = vsyncpa [#allocation3], 1 }

</bundles_post_ra>
